<compile_context>
chip_gen: v7x
topology: tpu7x:2x2x1
jax: 0.10.0
libtpu: 0.0.40
codegen_flags: <defaults>
</compile_context>

<pallas_src>
import functools
import math

import jax
import jax.numpy as jnp
from jax.experimental import pallas as pl
from jax.experimental.pallas import tpu as pltpu

MIN_POINTS = 15


# ----------------------------- tiling helpers --------------------------------

def _round_up(x, m):
    return ((x + m - 1) // m) * m


def _cdiv(a, b):
    return (a + b - 1) // b


def _num_tensorcores():
    """2 TensorCores per chip on v7x-class parts (sharded via the 'parallel'
    grid axis); 1 on v5e/v6e.  Perf hint only -- default to 1 on failure."""
    try:
        kind = jax.devices()[0].device_kind.lower()
    except Exception:
        return 1
    return 2 if ('v7' in kind or 'tpu7' in kind) else 1


def _row_tile(rows, row_bytes_dbuf, *, max_tile=8192, num_cores=1,
              vmem_cap_bytes=24 * 1024 * 1024):
    """Pick a row tile:
      * as big as possible (amortize ~0.35us per-grid-step overhead),
      * capped so the double-buffered in+out footprint <= vmem_cap_bytes
        (safe on v7x's 64 MiB physical VMEM),
      * multiple of 8 sublanes when actually tiling,
      * on megacore parts (num_cores > 1) keep >= num_cores blocks so the
        'parallel' axis shards across both TensorCores; on single-TC parts
        (v5e/v6e) a single full-extent block avoids pure grid overhead."""
    vmem_rows = max(8, (vmem_cap_bytes // max(row_bytes_dbuf, 1)) // 8 * 8)
    tile = min(max_tile, vmem_rows)
    if num_cores > 1 and rows > 2 * 8:
        tile = min(tile, _round_up(_cdiv(rows, num_cores), 8))
    if rows <= tile:
        return rows                      # single block equal to the full dim
    return tile                          # multiple of 8; ragged tail is masked


# ----------------------------- Pallas kernel ----------------------------------

def _fused_backbone_kernel(x_ref, w1_ref, b1_ref, w2_ref, b2_ref,
                           ws_ref, bs_ref, we_ref, be_ref,
                           y_ref, heads_ref, *, n_ego):
    """Fused: h = relu(x@W1+b1); y = h@W2+b2 + x; semseg = y@Ws+bs;
    ego = l2norm(y@We+be).  Everything stays in VMEM; y gets its own output,
    the two heads are packed into one slab via direct lane sub-slice stores."""
    x = x_ref[...]                                                     # [tm, C]
    h = jnp.maximum(
        jnp.dot(x, w1_ref[...], preferred_element_type=jnp.float32) + b1_ref[...],
        0.0)
    y = jnp.dot(h, w2_ref[...], preferred_element_type=jnp.float32) + b2_ref[...] + x
    s = jnp.dot(y, ws_ref[...], preferred_element_type=jnp.float32) + bs_ref[...]
    g = jnp.dot(y, we_ref[...], preferred_element_type=jnp.float32) + be_ref[...]
    # fused channel-wise L2 norm (rsqrt -> EUP slot); eps avoids 0/0 NaN.
    g = g * jax.lax.rsqrt(jnp.sum(g * g, axis=-1, keepdims=True) + 1e-12)

    y_ref[...] = y.astype(y_ref.dtype)
    # Direct sub-slice stores (no concat / zero-fill temp).  geo first so its
    # wider store starts at lane 0; semseg occupies the trailing lanes.
    heads_ref[:, :n_ego] = g.astype(heads_ref.dtype)
    heads_ref[:, n_ego:n_ego + s.shape[1]] = s.astype(heads_ref.dtype)


def pallas_fused_backbone(x, params, feats_dim, *, num_cores=1, max_tile=8192,
                          out_dtype=jnp.float32):
    """Run the fused backbone+heads kernel on sparse pillar features [M, C].

    Returns (bev_feats [M, C], fb_seg [M, n_sem], geo_feats [M, feats_dim]).
    bev_feats is its own Pallas output; the two heads come back as one packed
    [M, n_ego + n_sem] slab (geo first) and are split in the wrapper (cheap --
    the slab is only 18 lanes wide)."""
    M, C = x.shape
    n_sem = params['semseg_b'].shape[0]
    n_ego = feats_dim
    n_heads = n_ego + n_sem

    # double-buffered in + both outs, f32
    row_bytes_dbuf = 2 * 4 * (C + C + n_heads)
    tile_m = _row_tile(M, row_bytes_dbuf, max_tile=max_tile, num_cores=num_cores)
    grid = _cdiv(M, tile_m)

    weight_bytes = 4 * (2 * C * C + C * n_heads + 2 * C + n_heads)
    vmem_limit = int(min(max(tile_m * row_bytes_dbuf + 4 * weight_bytes + (4 << 20),
                             16 << 20), 40 << 20))
    cost = pl.CostEstimate(
        flops=2 * M * C * (2 * C + n_heads) + 6 * M * C,
        transcendentals=M,
        bytes_accessed=4 * M * (C + C + n_heads) + weight_bytes)

    y_out, heads_out = pl.pallas_call(
        functools.partial(_fused_backbone_kernel, n_ego=n_ego),
        out_shape=(jax.ShapeDtypeStruct((M, C), out_dtype),
                   jax.ShapeDtypeStruct((M, n_heads), out_dtype)),
        grid_spec=pltpu.PrefetchScalarGridSpec(
            num_scalar_prefetch=0,
            grid=(grid,),
            in_specs=[
                pl.BlockSpec((tile_m, C), lambda i: (i, 0)),
                pl.BlockSpec((C, C), lambda i: (0, 0)),       # W1 resident
                pl.BlockSpec((1, C), lambda i: (0, 0)),
                pl.BlockSpec((C, C), lambda i: (0, 0)),       # W2 resident
                pl.BlockSpec((1, C), lambda i: (0, 0)),
                pl.BlockSpec((C, n_sem), lambda i: (0, 0)),   # semseg head
                pl.BlockSpec((1, n_sem), lambda i: (0, 0)),
                pl.BlockSpec((C, n_ego), lambda i: (0, 0)),   # ego-feat head
                pl.BlockSpec((1, n_ego), lambda i: (0, 0)),
            ],
            out_specs=[
                pl.BlockSpec((tile_m, C), lambda i: (i, 0)),
                pl.BlockSpec((tile_m, n_heads), lambda i: (i, 0)),
            ],
        ),
        compiler_params=pltpu.CompilerParams(
            dimension_semantics=("parallel",),
            vmem_limit_bytes=vmem_limit),
        cost_estimate=cost,
    )(x,
      params['unet_w1'], params['unet_b1'].reshape(1, C),
      params['unet_w2'], params['unet_b2'].reshape(1, C),
      params['semseg_w'], params['semseg_b'].reshape(1, n_sem),
      params['egofeat_w'], params['egofeat_b'].reshape(1, n_ego))

    geo = heads_out[:, :n_ego]
    fb_seg = heads_out[:, n_ego:]
    return y_out, fb_seg, geo


def _backbone_zero_constants(params):
    """backbone(0) for empty BEV cells, computed once in plain XLA.
    h0 = relu(b1); y0 = h0@W2 + b2 (+ x=0); s0 = y0@Ws + bs; g0 = l2norm(y0@We + be)."""
    h0 = jnp.maximum(params['unet_b1'], 0.0)
    y0 = h0 @ params['unet_w2'] + params['unet_b2']
    s0 = y0 @ params['semseg_w'] + params['semseg_b']
    g0 = y0 @ params['egofeat_w'] + params['egofeat_b']
    g0 = g0 * jax.lax.rsqrt(jnp.sum(g0 * g0) + 1e-12)
    return y0, s0, g0


# ------------------------------- JAX glue -------------------------------------
# (scatter/gather ops are data-dependent and kept in plain JAX)

def segment_mean(x, seg_ids, num_segments):
    s = jax.ops.segment_sum(x, seg_ids, num_segments=num_segments)
    cnt = jax.ops.segment_sum(jnp.ones((x.shape[0], 1), x.dtype), seg_ids,
                              num_segments=num_segments)
    return s / jnp.maximum(cnt, 1.0)


def segment_max(x, seg_ids, num_segments):
    return jax.ops.segment_max(x, seg_ids, num_segments=num_segments)


def scatter_point_pillar(feats, coords, B, T, Ny, Nx, fill=None):
    """feats [M, C], coords [M, 5] = (b, z, y, x, t) -> BEV [B, T, Ny, Nx, C].
    `fill` (shape [C]) is the value for empty cells (defaults to zeros)."""
    C = feats.shape[1]
    b, y, x, t = coords[:, 0], coords[:, 2], coords[:, 3], coords[:, 4]
    if fill is None:
        base = jnp.zeros((B, T, Ny, Nx, C), feats.dtype)
    else:
        base = jnp.broadcast_to(fill.reshape(1, 1, 1, 1, C).astype(feats.dtype),
                                (B, T, Ny, Nx, C))
    return base.at[b, t, y, x].set(feats)


def inverse_scatter_point_pillar(bev, coords):
    b, y, x, t = coords[:, 0], coords[:, 2], coords[:, 3], coords[:, 4]
    return bev[b, t, y, x]


def get_transformed_grid(pose, H, W, x_reso, y_reso, x_min, y_min):
    xx = (jnp.arange(W, dtype=jnp.float32) + 0.5) * x_reso + x_min
    yy = (jnp.arange(H, dtype=jnp.float32) + 0.5) * y_reso + y_min
    xg = jnp.tile(xx.reshape(1, -1), (H, 1))
    yg = jnp.tile(yy.reshape(-1, 1), (1, W))
    grid = jnp.stack([xg, yg], axis=0).reshape(2, -1)                  # [2, H*W]
    tg = pose[:2, :2] @ grid + pose[:2, 3:4]
    tg = tg / jnp.array([[abs(x_min)], [abs(y_min)]], jnp.float32)
    return tg.reshape(2, H, W)


def grid_sample_bilinear(img, grid):
    """img: [H, W, C]; grid: [H, W, 2] with (x, y) in [-1, 1].
    Matches F.grid_sample(mode='bilinear', padding_mode='zeros',
    align_corners=False)."""
    H, W, C = img.shape
    x = (grid[..., 0] + 1.0) * W / 2.0 - 0.5
    y = (grid[..., 1] + 1.0) * H / 2.0 - 0.5
    x0 = jnp.floor(x)
    y0 = jnp.floor(y)

    def gather(xi, yi):
        valid = (xi >= 0) & (xi < W) & (yi >= 0) & (yi < H)
        xi_c = jnp.clip(xi, 0, W - 1).astype(jnp.int32)
        yi_c = jnp.clip(yi, 0, H - 1).astype(jnp.int32)
        v = img[yi_c, xi_c]
        return jnp.where(valid[..., None], v, 0.0)

    wx1 = x - x0
    wx0 = 1.0 - wx1
    wy1 = y - y0
    wy0 = 1.0 - wy1
    out = (gather(x0, y0) * (wx0 * wy0)[..., None]
           + gather(x0 + 1, y0) * (wx1 * wy0)[..., None]
           + gather(x0, y0 + 1) * (wx0 * wy1)[..., None]
           + gather(x0 + 1, y0 + 1) * (wx1 * wy1)[..., None])
    return out


def warp_feats(bev_feats, pose_est, resolution, pc_range):
    """bev_feats [B, T, Ny, Nx, C], pose_est [B, T, 4, 4] -> [B, T, Ny, Nx, C].
    Fully batched / vmapped over B*(T-1) frames (no Python loops)."""
    B, T, Ny, Nx, C = bev_feats.shape
    poses_inv = jnp.linalg.inv(pose_est[:, 1:].reshape(-1, 4, 4))      # [B*(T-1),4,4]
    grids = jax.vmap(lambda p: get_transformed_grid(
        p, Ny, Nx, resolution[0], resolution[1], pc_range[0], pc_range[1]))(poses_inv)
    grids = jnp.transpose(grids, (0, 2, 3, 1))                         # [B*(T-1),Ny,Nx,2]
    frames = bev_feats[:, 1:].reshape(-1, Ny, Nx, C)
    sampled = jax.vmap(grid_sample_bilinear)(frames, grids)
    sampled = sampled.reshape(B, T - 1, Ny, Nx, C)
    # NOTE: reproduces the reference exactly, where `frame_idx` leaks out of
    # the inner loop and equals T-1 (not 0) in the concat below.
    anchor = bev_feats[:, T - 1:T]
    return jnp.concatenate([anchor, sampled], axis=1)


def transform_points(points, time_indice, transformation):
    """align points: out[k] = R[b_k,t_k] @ p[k] + t[b_k,t_k].
    The reference's (b, t) double loop reduces to a gather + batched affine.
    Kept in XLA: with only 3 coords on the lane axis a Pallas kernel would be
    >90% masked and dominated by call overhead."""
    per_pt = transformation[time_indice[:, 0], time_indice[:, 1]]      # [N, 4, 4]
    return (jnp.einsum('nij,nj->ni', per_pt[:, :3, :3], points)
            + per_pt[:, :3, 3])


def make_synthetic_poses(B, T):
    # TODO(synk): EgoMotionHead (pose solver) definition is not provided; a
    # deterministic synthetic SE(3) estimate stands in for its output.
    poses = []
    for b in range(B):
        row = []
        for t in range(T):
            ang = 0.05 * t * (b + 1)
            c, s = math.cos(ang), math.sin(ang)
            row.append(jnp.array([[c, -s, 0.0, 0.1 * t],
                                  [s, c, 0.0, -0.05 * t],
                                  [0.0, 0.0, 1.0, 0.0],
                                  [0.0, 0.0, 0.0, 1.0]], jnp.float32))
        poses.append(jnp.stack(row))
    return jnp.stack(poses)


# ------------------------------ MotionNet forward -----------------------------

def init_params(key, cfg):
    c_in_pt = 8
    C = cfg['unet']['in_channels']
    feats_dim = cfg['pose_estimation']['feats_dim']
    ks = jax.random.split(key, 5)

    def lin(k, i, o, scale=0.1):
        kw, kb = jax.random.split(k)
        return (scale * jax.random.normal(kw, (i, o), jnp.float32),
                scale * jax.random.normal(kb, (o,), jnp.float32))

    params = {}
    params['pillar_w'], params['pillar_b'] = lin(ks[0], c_in_pt, C)
    params['unet_w1'], params['unet_b1'] = lin(ks[1], C, C)
    params['unet_w2'], params['unet_b2'] = lin(ks[2], C, C)
    params['semseg_w'], params['semseg_b'] = lin(ks[3], C, 2)
    params['egofeat_w'], params['egofeat_b'] = lin(ks[4], C, feats_dim)
    return params


def motionnet_forward(params, inputs, cfg):
    input_points = inputs['input_points'].astype(jnp.float32)        # [N, 3]
    time_indice = inputs['time_indice']                               # [N, 2]
    fb_labels = inputs['fb_labels'].astype(jnp.float32)               # [N, 1]
    p2v = inputs['point_to_voxel_map'][:, 0].astype(jnp.int32)        # [N]
    ego_motion_gt = inputs['ego_motion_gt'].astype(jnp.float32)       # [B, T, 4, 4]
    coordinates = inputs['coordinates'].astype(jnp.int32)             # [M, 5]
    num_voxels = inputs['num_voxels']                                 # [B]
    Nx, Ny, Nz, T = [int(v) for v in inputs['shape'][0]]

    resolution = cfg['voxel_generator']['voxel_size']
    pc_range = cfg['voxel_generator']['range']
    feats_dim = cfg['pose_estimation']['feats_dim']

    M = coordinates.shape[0]
    B = num_voxels.shape[0]
    N = input_points.shape[0]
    C = cfg['unet']['in_channels']

    results = {}

    # scatter(..., reduce='mean'/'max') over point->voxel map
    pillar_mean = segment_mean(input_points, p2v, M)                  # [M, 3]
    fb_labels_sub = segment_max(fb_labels, p2v, M)                    # [M, 1]

    occupancy = jnp.ones((M, 1), jnp.float32)
    occ_map = scatter_point_pillar(occupancy, coordinates, B, T, Ny, Nx)
    fb_map = scatter_point_pillar(fb_labels_sub, coordinates, B, T, Ny, Nx)
    pts_mean_map = scatter_point_pillar(pillar_mean, coordinates, B, T, Ny, Nx)
    results['fb_seg_gt'] = fb_map
    results['occ_map'] = occ_map
    results['pts_mean_map'] = pts_mean_map

    # ---- pillar encoder (PillarFeatureNet-style): point MLP + max pool.
    # The [N,8]@[8,32]+ReLU is left to XLA so it fuses with the concat
    # (a Pallas kernel here is >94% MXU padding plus an extra HBM pass).
    centered = input_points - pillar_mean[p2v]
    t_norm = time_indice[:, 1:2].astype(jnp.float32) / max(T - 1, 1)
    point_feats = jnp.concatenate(
        [input_points, centered, t_norm, jnp.ones((N, 1), jnp.float32)], axis=1)  # [N, 8]
    point_embed = jnp.maximum(point_feats @ params['pillar_w'] + params['pillar_b'], 0.0)
    input_features = segment_max(point_embed, p2v, M)                 # [M, C]

    # ---- UNet backbone + both 1x1-conv heads + channel L2 norm: ONE fused
    # Pallas kernel over the SPARSE pillar set (M rows), then scatter results
    # into maps pre-filled with the constant empty-cell output backbone(0).
    # TODO(synk): real UNet topology (cfg['unet']) not provided; a channel-preserving
    # residual 1x1-conv stack (Pallas matmuls) stands in for the multi-scale conv net.
    num_cores = _num_tensorcores()
    pillar_y, pillar_seg, pillar_geo = pallas_fused_backbone(
        input_features, params, feats_dim, num_cores=num_cores)
    y0, s0, g0 = _backbone_zero_constants(params)

    bev_feats = scatter_point_pillar(pillar_y, coordinates, B, T, Ny, Nx, fill=y0)
    fb_seg = scatter_point_pillar(pillar_seg, coordinates, B, T, Ny, Nx, fill=s0)
    geometric_feats = scatter_point_pillar(pillar_geo, coordinates, B, T, Ny, Nx, fill=g0)

    # ---- semantic segmentation head outputs
    results['fb_seg_est'] = fb_seg                                    # [B,T,Ny,Nx,2]
    # fb_est gathered at occupied pillars == per-pillar argmax of the logits
    fb_est_occ_pillar = jnp.argmax(pillar_seg, axis=-1)[:, None].astype(jnp.float32)
    fb_est_per_point = fb_est_occ_pillar[p2v]                         # [N, 1]
    results['fb_est_per_points'] = fb_est_per_point

    # ---- ego feature head (L2-normalized in-kernel)
    results['geometric_feats'] = geometric_feats

    results['ego_motion_gt'] = ego_motion_gt
    pose_est = make_synthetic_poses(B, T)
    results['ego_motion_est'] = pose_est

    # ---- warp BEV features with estimated poses (grid_sample: batched JAX gather)
    warped_feats = warp_feats(bev_feats, pose_est, resolution, pc_range)
    results['warped_feats'] = warped_feats

    # ---- transform points with per-point pose (gather + batched affine)
    transformed_points = transform_points(input_points, time_indice, pose_est)
    results['transformed_points'] = transformed_points

    fb_mask = jnp.logical_or(fb_labels[:, 0] == 1, fb_est_per_point[:, 0] == 1)
    results['fb_mask'] = fb_mask
    full_mos = jnp.zeros((N, 2), jnp.float32).at[:, 0].set(1.0)
    full_offset = jnp.zeros((N, 2), jnp.float32)
    # TODO(synk): STPN motion head, Cluster and AlignNet reconstructor definitions
    # are not provided; their refinement of mos/offset/rec_est is skipped and the
    # default (static) predictions are returned, as the reference does when
    # fb_mask.sum() <= MIN_POINTS.
    results['mos_est'] = full_mos
    results['offset_est'] = full_offset
    results['rec_est'] = transformed_points
    return results


# --------------------------------- Driver -------------------------------------

def make_inputs(key, cfg):
    B, T = 2, 2
    Nx = Ny = 16
    Nz = 1
    pillars_per_bt = 32
    pts_per_pillar = 2
    resolution = cfg['voxel_generator']['voxel_size']
    pc_range = cfg['voxel_generator']['range']

    coords = []
    for b in range(B):
        for t in range(T):
            for i in range(pillars_per_bt):
                cell = i * (Ny * Nx // pillars_per_bt)     # unique BEV cells
                y, x = cell // Nx, cell % Nx
                coords.append([b, 0, y, x, t])
    coordinates = jnp.array(coords, jnp.int32)             # [M, 5]
    M = coordinates.shape[0]

    p2v = jnp.repeat(jnp.arange(M, dtype=jnp.int32), pts_per_pillar)  # [N]
    N = p2v.shape[0]

    cb, cy, cx, ct = (coordinates[:, 0], coordinates[:, 2],
                      coordinates[:, 3], coordinates[:, 4])
    center_x = pc_range[0] + (cx.astype(jnp.float32) + 0.5) * resolution[0]
    center_y = pc_range[1] + (cy.astype(jnp.float32) + 0.5) * resolution[1]
    centers = jnp.stack([center_x, center_y, jnp.zeros_like(center_x)], axis=1)

    k1, k2 = jax.random.split(key)
    noise = 0.5 * jax.random.normal(k1, (N, 3), jnp.float32)
    input_points = centers[p2v] + noise

    time_indice = jnp.stack([cb[p2v], ct[p2v]], axis=1).astype(jnp.int32)  # [N, 2]
    fb_labels = jax.random.bernoulli(k2, 0.3, (N, 1)).astype(jnp.float32)

    ego_motion_gt = jnp.tile(jnp.eye(4, dtype=jnp.float32), (B, T, 1, 1))
    num_voxels = jnp.full((B,), M // B, jnp.int32)
    shape = jnp.array([[Nx, Ny, Nz, T]], jnp.int32)

    return {
        'input_points': input_points,
        'time_indice': time_indice,
        'fb_labels': fb_labels,
        'point_to_voxel_map': p2v.reshape(-1, 1),
        'ego_motion_gt': ego_motion_gt,
        'coordinates': coordinates,
        'num_voxels': num_voxels,
        'shape': shape,
    }


if __name__ == "__main__":
    cfg = {
        'pillar_encoder': {'in_channels': 8, 'out_channels': 32},
        'unet': {'in_channels': 32},
        'pose_estimation': {'feats_dim': 16},
        'voxel_generator': {'voxel_size': [4.0, 4.0, 4.0],
                            'range': [-32.0, -32.0, -3.0, 32.0, 32.0, 1.0]},
        'stpn': {'feat_dim': 32},
        'misc': {'mode': 'train'},
    }
    key = jax.random.PRNGKey(0)
    k_param, k_data = jax.random.split(key)
    params = init_params(k_param, cfg)
    inputs = make_inputs(k_data, cfg)

    results = motionnet_forward(params, inputs, cfg)
    for leaf in jax.tree_util.tree_leaves(results):
        jax.block_until_ready(leaf)
    print("KERNEL_OK")
</pallas_src>

<mosaic_0001>
module attributes {stable_mosaic.version = 11 : i64} {
  func.func @_fused_backbone_kernel(%arg0: i32, %arg1: memref<128x32xf32, #tpu.memory_space<vmem>>, %arg2: memref<32x32xf32, #tpu.memory_space<vmem>>, %arg3: memref<1x32xf32, #tpu.memory_space<vmem>>, %arg4: memref<32x32xf32, #tpu.memory_space<vmem>>, %arg5: memref<1x32xf32, #tpu.memory_space<vmem>>, %arg6: memref<32x2xf32, #tpu.memory_space<vmem>>, %arg7: memref<1x2xf32, #tpu.memory_space<vmem>>, %arg8: memref<32x16xf32, #tpu.memory_space<vmem>>, %arg9: memref<1x16xf32, #tpu.memory_space<vmem>>, %arg10: memref<128x32xf32, #tpu.memory_space<vmem>>, %arg11: memref<128x18xf32, #tpu.memory_space<vmem>>) attributes {dimension_semantics = [#tpu.dimension_semantics<parallel>], iteration_bounds = array<i64: 1>, scalar_prefetch = 0 : i64, scratch_operands = 0 : i64, tpu.core_type = #tpu.core_type<tc>, window_params = [{transform_indices = @transform_0, window_bounds = array<i64: 128, 32>}, {pipeline_mode = #tpu.pipeline_mode<synchronous>, transform_indices = @transform_1, window_bounds = array<i64: 32, 32>}, {pipeline_mode = #tpu.pipeline_mode<synchronous>, transform_indices = @transform_2, window_bounds = array<i64: 1, 32>}, {pipeline_mode = #tpu.pipeline_mode<synchronous>, transform_indices = @transform_3, window_bounds = array<i64: 32, 32>}, {pipeline_mode = #tpu.pipeline_mode<synchronous>, transform_indices = @transform_4, window_bounds = array<i64: 1, 32>}, {pipeline_mode = #tpu.pipeline_mode<synchronous>, transform_indices = @transform_5, window_bounds = array<i64: 32, 2>}, {pipeline_mode = #tpu.pipeline_mode<synchronous>, transform_indices = @transform_6, window_bounds = array<i64: 1, 2>}, {pipeline_mode = #tpu.pipeline_mode<synchronous>, transform_indices = @transform_7, window_bounds = array<i64: 32, 16>}, {pipeline_mode = #tpu.pipeline_mode<synchronous>, transform_indices = @transform_8, window_bounds = array<i64: 1, 16>}, {transform_indices = @transform_9, window_bounds = array<i64: 128, 32>}, {transform_indices = @transform_10, window_bounds = array<i64: 128, 18>}]} {
    %c0 = arith.constant 0 : index
    %c0_0 = arith.constant 0 : index
    %0 = vector.load %arg1[%c0, %c0_0] : memref<128x32xf32, #tpu.memory_space<vmem>>, vector<128x32xf32>
    %c0_1 = arith.constant 0 : index
    %c0_2 = arith.constant 0 : index
    %1 = vector.load %arg2[%c0_1, %c0_2] : memref<32x32xf32, #tpu.memory_space<vmem>>, vector<32x32xf32>
    %cst = arith.constant dense<0.000000e+00> : vector<128x32xf32>
    %2 = tpu.matmul %0, %1, %cst {dimension_numbers = #tpu.dot_dimension_numbers<[1], [0], [0], [1], [0, 0, 1, 1], [], []>} : vector<128x32xf32>, vector<32x32xf32>, vector<128x32xf32> -> vector<128x32xf32>
    %c0_3 = arith.constant 0 : index
    %c0_4 = arith.constant 0 : index
    %3 = vector.load %arg3[%c0_3, %c0_4] : memref<1x32xf32, #tpu.memory_space<vmem>>, vector<1x32xf32>
    %4 = vector.broadcast %3 : vector<1x32xf32> to vector<128x32xf32>
    %5 = arith.addf %2, %4 : vector<128x32xf32>
    %cst_5 = arith.constant 0.000000e+00 : f32
    %6 = vector.broadcast %cst_5 : f32 to vector<128x32xf32>
    %7 = arith.maximumf %5, %6 : vector<128x32xf32>
    %c0_6 = arith.constant 0 : index
    %c0_7 = arith.constant 0 : index
    %8 = vector.load %arg4[%c0_6, %c0_7] : memref<32x32xf32, #tpu.memory_space<vmem>>, vector<32x32xf32>
    %cst_8 = arith.constant dense<0.000000e+00> : vector<128x32xf32>
    %9 = tpu.matmul %7, %8, %cst_8 {dimension_numbers = #tpu.dot_dimension_numbers<[1], [0], [0], [1], [0, 0, 1, 1], [], []>} : vector<128x32xf32>, vector<32x32xf32>, vector<128x32xf32> -> vector<128x32xf32>
    %c0_9 = arith.constant 0 : index
    %c0_10 = arith.constant 0 : index
    %10 = vector.load %arg5[%c0_9, %c0_10] : memref<1x32xf32, #tpu.memory_space<vmem>>, vector<1x32xf32>
    %11 = vector.broadcast %10 : vector<1x32xf32> to vector<128x32xf32>
    %12 = arith.addf %9, %11 : vector<128x32xf32>
    %13 = arith.addf %12, %0 : vector<128x32xf32>
    %c0_11 = arith.constant 0 : index
    %c0_12 = arith.constant 0 : index
    %14 = vector.load %arg6[%c0_11, %c0_12] : memref<32x2xf32, #tpu.memory_space<vmem>>, vector<32x2xf32>
    %cst_13 = arith.constant dense<0.000000e+00> : vector<128x2xf32>
    %15 = tpu.matmul %13, %14, %cst_13 {dimension_numbers = #tpu.dot_dimension_numbers<[1], [0], [0], [1], [0, 0, 1, 1], [], []>} : vector<128x32xf32>, vector<32x2xf32>, vector<128x2xf32> -> vector<128x2xf32>
    %c0_14 = arith.constant 0 : index
    %c0_15 = arith.constant 0 : index
    %16 = vector.load %arg7[%c0_14, %c0_15] : memref<1x2xf32, #tpu.memory_space<vmem>>, vector<1x2xf32>
    %17 = vector.broadcast %16 : vector<1x2xf32> to vector<128x2xf32>
    %18 = arith.addf %15, %17 : vector<128x2xf32>
    %c0_16 = arith.constant 0 : index
    %c0_17 = arith.constant 0 : index
    %19 = vector.load %arg8[%c0_16, %c0_17] : memref<32x16xf32, #tpu.memory_space<vmem>>, vector<32x16xf32>
    %cst_18 = arith.constant dense<0.000000e+00> : vector<128x16xf32>
    %20 = tpu.matmul %13, %19, %cst_18 {dimension_numbers = #tpu.dot_dimension_numbers<[1], [0], [0], [1], [0, 0, 1, 1], [], []>} : vector<128x32xf32>, vector<32x16xf32>, vector<128x16xf32> -> vector<128x16xf32>
    %c0_19 = arith.constant 0 : index
    %c0_20 = arith.constant 0 : index
    %21 = vector.load %arg9[%c0_19, %c0_20] : memref<1x16xf32, #tpu.memory_space<vmem>>, vector<1x16xf32>
    %22 = vector.broadcast %21 : vector<1x16xf32> to vector<128x16xf32>
    %23 = arith.addf %20, %22 : vector<128x16xf32>
    %24 = arith.mulf %23, %23 : vector<128x16xf32>
    %cst_21 = arith.constant dense<0.000000e+00> : vector<128xf32>
    %25 = vector.multi_reduction <add>, %24, %cst_21 [1] : vector<128x16xf32> to vector<128xf32>
    %26 = vector.shape_cast %25 : vector<128xf32> to vector<128x1xf32>
    %cst_22 = arith.constant 9.99999996E-13 : f32
    %27 = vector.broadcast %cst_22 : f32 to vector<128x1xf32>
    %28 = arith.addf %26, %27 : vector<128x1xf32>
    %29 = math.rsqrt %28 : vector<128x1xf32>
    %30 = vector.broadcast %29 : vector<128x1xf32> to vector<128x16xf32>
    %31 = arith.mulf %23, %30 : vector<128x16xf32>
    %c0_23 = arith.constant 0 : index
    %c0_24 = arith.constant 0 : index
    %32 = vector.load %arg10[%c0_23, %c0_24] : memref<128x32xf32, #tpu.memory_space<vmem>>, vector<128x32xf32>
    tpu.vector_store %arg10[%c0_23, %c0_24], %13 {strides = array<i32>} : memref<128x32xf32, #tpu.memory_space<vmem>>, vector<128x32xf32>,
    %c0_25 = arith.constant 0 : index
    %c0_26 = arith.constant 0 : index
    %33 = vector.load %arg11[%c0_25, %c0_26] : memref<128x18xf32, #tpu.memory_space<vmem>>, vector<128x16xf32>
    tpu.vector_store %arg11[%c0_25, %c0_26], %31 {strides = array<i32>} : memref<128x18xf32, #tpu.memory_space<vmem>>, vector<128x16xf32>,
    %c0_27 = arith.constant 0 : index
    %c16 = arith.constant 16 : index
    %34 = vector.load %arg11[%c0_27, %c16] : memref<128x18xf32, #tpu.memory_space<vmem>>, vector<128x2xf32>
    tpu.vector_store %arg11[%c0_27, %c16], %18 {strides = array<i32>} : memref<128x18xf32, #tpu.memory_space<vmem>>, vector<128x2xf32>,
    return
  }
  func.func @transform_0(%arg0: i32) -> (i32, i32) {
    %c0_i32 = arith.constant 0 : i32
    %c0_i32_0 = arith.constant 0 : i32
    return %arg0, %c0_i32 : i32, i32
  }
  func.func @transform_1(%arg0: i32) -> (i32, i32) {
    %c0_i32 = arith.constant 0 : i32
    %c0_i32_0 = arith.constant 0 : i32
    %c0_i32_1 = arith.constant 0 : i32
    return %c0_i32, %c0_i32_0 : i32, i32
  }
  func.func @transform_2(%arg0: i32) -> (i32, i32) {
    %c0_i32 = arith.constant 0 : i32
    %c0_i32_0 = arith.constant 0 : i32
    %c0_i32_1 = arith.constant 0 : i32
    return %c0_i32, %c0_i32_0 : i32, i32
  }
  func.func @transform_3(%arg0: i32) -> (i32, i32) {
    %c0_i32 = arith.constant 0 : i32
    %c0_i32_0 = arith.constant 0 : i32
    %c0_i32_1 = arith.constant 0 : i32
    return %c0_i32, %c0_i32_0 : i32, i32
  }
  func.func @transform_4(%arg0: i32) -> (i32, i32) {
    %c0_i32 = arith.constant 0 : i32
    %c0_i32_0 = arith.constant 0 : i32
    %c0_i32_1 = arith.constant 0 : i32
    return %c0_i32, %c0_i32_0 : i32, i32
  }
  func.func @transform_5(%arg0: i32) -> (i32, i32) {
    %c0_i32 = arith.constant 0 : i32
    %c0_i32_0 = arith.constant 0 : i32
    %c0_i32_1 = arith.constant 0 : i32
    return %c0_i32, %c0_i32_0 : i32, i32
  }
  func.func @transform_6(%arg0: i32) -> (i32, i32) {
    %c0_i32 = arith.constant 0 : i32
    %c0_i32_0 = arith.constant 0 : i32
    %c0_i32_1 = arith.constant 0 : i32
    return %c0_i32, %c0_i32_0 : i32, i32
  }
  func.func @transform_7(%arg0: i32) -> (i32, i32) {
    %c0_i32 = arith.constant 0 : i32
    %c0_i32_0 = arith.constant 0 : i32
    %c0_i32_1 = arith.constant 0 : i32
    return %c0_i32, %c0_i32_0 : i32, i32
  }
  func.func @transform_8(%arg0: i32) -> (i32, i32) {
    %c0_i32 = arith.constant 0 : i32
    %c0_i32_0 = arith.constant 0 : i32
    %c0_i32_1 = arith.constant 0 : i32
    return %c0_i32, %c0_i32_0 : i32, i32
  }
  func.func @transform_9(%arg0: i32) -> (i32, i32) {
    %c0_i32 = arith.constant 0 : i32
    %c0_i32_0 = arith.constant 0 : i32
    return %arg0, %c0_i32 : i32, i32
  }
  func.func @transform_10(%arg0: i32) -> (i32, i32) {
    %c0_i32 = arith.constant 0 : i32
    %c0_i32_0 = arith.constant 0 : i32
    return %arg0, %c0_i32 : i32, i32
  }
}

</mosaic_0001>

<bundles_post_ra>
// kernel: tpu_custom_call.1
= control target key start
LH: loop header
LB: loop body
LE: loop exit
PB: predicated region body
PF: predicated region fallthrough
CT: control target
= control target key end

     0   :  { %vm61_vm0 = vcmask 261120   ;;  %vm867_vm1 = vcmask 130048   ;;  %vm1060_vm2 = vcmask 146560   ;;  %s2118_s1 = inlined_call_operand.vmem [shape: f32[32,32], index: 1, kind: input, shape index: {}]   ;;  %s2119_s0 = inlined_call_operand.vmem [shape: f32[128,32], index: 0, kind: input, shape index: {}]   ;;  %s2120_s3 = inlined_call_operand.vmem [shape: f32[32,32], index: 3, kind: input, shape index: {}]   ;;  %s2121_s5 = inlined_call_operand.vmem [shape: f32[32,2], index: 5, kind: input, shape index: {}]   ;;  %s2122_s7 = inlined_call_operand.vmem [shape: f32[32,16], index: 7, kind: input, shape index: {}]   ;;  %s2123_s2 = inlined_call_operand.vmem [shape: f32[1,32], index: 2, kind: input, shape index: {}]   ;;  %s2124_s4 = inlined_call_operand.vmem [shape: f32[1,32], index: 4, kind: input, shape index: {}]   ;;  %s2125_s9 = inlined_call_operand.vmem [shape: f32[128,32], index: 9, kind: output, shape index: {0}]   ;;  %s2126_s6 = inlined_call_operand.vmem [shape: f32[1,2], index: 6, kind: input, shape index: {}]   ;;  %s2127_s8 = inlined_call_operand.vmem [shape: f32[1,16], index: 8, kind: input, shape index: {}]   ;;  %s2128_s10 = inlined_call_operand.vmem [shape: f32[128,18], index: 10, kind: output, shape index: {1}]  }
   0x1   :  { %v50_v0 = vld [vmem:[%s2118_s1] sm:$0xff]  ;;  %v51_v1 = vld [vmem:[%s2118_s1 + $0x8] sm:$0xff]  ;;  %v52_v2 = vld [vmem:[%s2118_s1 + $0x10] sm:$0xff] }
   0x2   :  { %v1361_v3 = vpack.c.bf16 %v51_v1, %v50_v0  ;;  %v53_v4 = vld [vmem:[%s2118_s1 + $0x18] sm:$0xff]  ;;  %v1497_v5 = vld [vmem:[%s2119_s0] sm:$0xff]  ;;  %v272_v8 = vld [vmem:[%s2120_s3 + $0x8] sm:$0xff] }
   0x3   :  { %v1365_v6 = vpack.c.bf16 %v53_v4, %v52_v2  ;;  %1241 = vmatprep.mubr.msk.f32.mxu0 %vm61_vm0, %v1497_v5  ;;  %v271_v7 = vld [vmem:[%s2120_s3] sm:$0xff]  ;;  %v1510_v10 = vld [vmem:[%s2119_s0 + $0x8] sm:$0xff]  ;;  %v1515_v11 = vld [vmem:[%s2119_s0 + $0x10] sm:$0xff] }
   0x4   :  { %1362 = vmatprep.subr.bf16.mxu0 %v1361_v3  ;;  %v1369_v9 = vpack.c.bf16 %v272_v8, %v271_v7  ;;  %v1524_v12 = vld [vmem:[%s2119_s0 + $0x18] sm:$0xff]  ;;  %v1529_v13 = vld [vmem:[%s2119_s0 + $0x20] sm:$0xff]  ;;  %v1538_v14 = vld [vmem:[%s2119_s0 + $0x28] sm:$0xff] }
   0x5   :  { %1364 = vmatpush3.bf16.msra.mxu0 %v1361_v3  ;;  %v1543_v15 = vld [vmem:[%s2119_s0 + $0x30] sm:$0xff]  ;;  %v1552_v16 = vld [vmem:[%s2119_s0 + $0x38] sm:$0xff]  ;;  %v1557_v17 = vld [vmem:[%s2119_s0 + $0x40] sm:$0xff] }
   0x6   :  { %1366 = vmatprep.subr.bf16.mxu0 %v1365_v6  ;;  %1370 = vmatprep.subr.bf16.mxu1 %v1369_v9  ;;  %v1566_v18 = vld [vmem:[%s2119_s0 + $0x48] sm:$0xff]  ;;  %v1571_v19 = vld [vmem:[%s2119_s0 + $0x50] sm:$0xff]  ;;  %v1580_v20 = vld [vmem:[%s2119_s0 + $0x58] sm:$0xff] }
   0x7   :  { %1372 = vmatpush3.bf16.msra.mxu1 %v1369_v9  ;;  %v1585_v21 = vld [vmem:[%s2119_s0 + $0x60] sm:$0xff]  ;;  %v1594_v22 = vld [vmem:[%s2119_s0 + $0x68] sm:$0xff]  ;;  %v273_v23 = vld [vmem:[%s2120_s3 + $0x10] sm:$0xff] }
   0x8   :  { %v274_v24 = vld [vmem:[%s2120_s3 + $0x18] sm:$0xff]  ;;  %v1607_v25 = vld [vmem:[%s2119_s0 + $0x70] sm:$0xff]  ;;  %v491_v28 = vld [vmem:[%s2121_s5] sm:$0xff] }
   0x9   :  { %1368 = vmatpush3.bf16.msra.mxu0 %v1365_v6  ;;  %v1373_v26 = vpack.c.bf16 %v274_v24, %v273_v23  ;;  %v1614_v27 = vld [vmem:[%s2119_s0 + $0x78] sm:$0xff]  ;;  %v492_v29 = vld [vmem:[%s2121_s5 + $0x8] sm:$0xff]  ;;  %v493_v30 = vld [vmem:[%s2121_s5 + $0x10] sm:$0xff] }
   0xa   :  { %v1377_v31 = vpack.c.bf16 %v492_v29, %v491_v28  ;;  %v494_v32 = vld [vmem:[%s2121_s5 + $0x18] sm:$0xff]  ;;  %v695_v34 = vld [vmem:[%s2122_s7] sm:$0xff]  ;;  %v696_v35 = vld [vmem:[%s2122_s7 + $0x8] sm:$0xff] }
   0xb   :  { %1374 = vmatprep.subr.bf16.mxu1 %v1373_v26  ;;  %v1381_v33 = vpack.c.bf16 %v494_v32, %v493_v30  ;;  %v1385_v36 = vpack.c.bf16 %v696_v35, %v695_v34  ;;  %v1085_v37 = vld [vmem:[%s2123_s2] ss:$0 sm:$0xff] }
   0xc   :  { %1242 = vmatmul.mubr.msk.f32.vlgmr.msra.gmra.mrb[0].mxu0 %vm61_vm0, %v1510_v10  ;;  %1376 = vmatpush3.bf16.msra.mxu1 %v1373_v26 }
   0xd   :  { %1244 = vmatprep.mubr.msk.f32.mxu0 %vm61_vm0, %v1515_v11  ;;  %1378 = vmatprep.subr.bf16.mxu0 %v1377_v31 }
   0xe   :  { %1380 = vmatpush3.bf16.msra.mxu0 %v1377_v31  ;;  %1386 = vmatprep.subr.bf16.mxu1 %v1385_v36 }
   0xf   :  { %1382 = vmatprep.subr.bf16.mxu0 %v1381_v33 }
  0x10   :  { %1245 = vmatmul.mubr.msk.f32.gmra.mrb[2].mxu0 %vm61_vm0, %v1524_v12 }
  0x11   :  { %1247 = vmatprep.mubr.msk.f32.mxu0 %vm61_vm0, %v1529_v13 }
  0x12   :  { %1384 = vmatpush3.bf16.msra.mxu0 %v1381_v33 }
  0x14   :  { %1248 = vmatmul.mubr.msk.f32.gmra.mrb[4].mxu0 %vm61_vm0, %v1538_v14 }
  0x15   :  { %1250 = vmatprep.mubr.msk.f32.mxu0 %vm61_vm0, %v1543_v15 }
  0x18   :  { %1251 = vmatmul.mubr.msk.f32.gmra.mrb[6].mxu0 %vm61_vm0, %v1552_v16 }
  0x19   :  { %1253 = vmatprep.mubr.msk.f32.mxu0 %vm61_vm0, %v1557_v17 }
  0x1c   :  { %1254 = vmatmul.mubr.msk.f32.gmra.mrb[8].mxu0 %vm61_vm0, %v1566_v18 }
  0x1d   :  { %1256 = vmatprep.mubr.msk.f32.mxu0 %vm61_vm0, %v1571_v19 }
  0x20   :  { %1257 = vmatmul.mubr.msk.f32.gmra.mrb[10].mxu0 %vm61_vm0, %v1580_v20 }
  0x21   :  { %1259 = vmatprep.mubr.msk.f32.mxu0 %vm61_vm0, %v1585_v21 }
  0x24   :  { %1260 = vmatmul.mubr.msk.f32.gmra.mrb[12].mxu0 %vm61_vm0, %v1594_v22 }
  0x25   :  { %1262 = vmatprep.mubr.msk.f32.mxu0 %vm61_vm0, %v1607_v25 }
  0x28   :  { %1263 = vmatmul.mubr.msk.f32.gmra.mrb[14].mxu0 %vm61_vm0, %v1614_v27 }
  0xdf   :  { %v1243_v38 = vpop.f32.mrb[0].mxu0 }
  0xe0   :  { %v182_v39 = vadd.f32 %v1243_v38, %v1085_v37  ;;  %v176_v40 = vpop.f32.mrb[1].mxu0 }
  0xe1   :  { %v177_v41 = vadd.f32 %v1085_v37, %v176_v40  ;;  %v698_v40 = vld [vmem:[%s2122_s7 + $0x18] sm:$0xff] }
  0xe2   :  { %v256_v44 = vmax.f32 %v182_v39, 0.0  ;;  %v697_v39 = vld [vmem:[%s2122_s7 + $0x10] sm:$0xff] }
  0xe3   :  { %v255_v42 = vmax.f32 %v177_v41, 0.0  ;;  %v1246_v43 = vpop.f32.mrb[2].mxu0  ;;  %v1389_v41 = vpack.c.bf16 %v698_v40, %v697_v39 }
  0xe4   :  { %v192_v45 = vadd.f32 %v1246_v43, %v1085_v37  ;;  %v186_v46 = vpop.f32.mrb[3].mxu0 }
  0xe5   :  { %v187_v47 = vadd.f32 %v1085_v37, %v186_v46  ;;  %1273 = vmatprep.mubr.msk.f32.mxu1 %vm61_vm0, %v255_v42 }
  0xe6   :  { %1274 = vmatmul.mubr.msk.f32.vlgmr.msra.gmra.mrb[0].mxu1 %vm61_vm0, %v256_v44  ;;  %v258_v50 = vmax.f32 %v192_v45, 0.0 }
  0xe7   :  { %v257_v48 = vmax.f32 %v187_v47, 0.0  ;;  %v1249_v49 = vpop.f32.mrb[4].mxu0  ;;  %1388 = vmatpush3.bf16.msra.mxu1 %v1385_v36 }
  0xe8   :  { %v202_v51 = vadd.f32 %v1249_v49, %v1085_v37  ;;  %v196_v52 = vpop.f32.mrb[5].mxu0  ;;  %1390 = vmatprep.subr.bf16.mxu1 %v1389_v41 }
  0xe9   :  { %1276 = vmatprep.mubr.msk.f32.mxu1 %vm61_vm0, %v257_v48  ;;  %v197_v53 = vadd.f32 %v1085_v37, %v196_v52 }
  0xea   :  { %1277 = vmatmul.mubr.msk.f32.gmra.mrb[2].mxu1 %vm61_vm0, %v258_v50  ;;  %v260_v54 = vmax.f32 %v202_v51, 0.0 }
  0xeb   :  { %v259_v55 = vmax.f32 %v197_v53, 0.0  ;;  %v1252_v56 = vpop.f32.mrb[6].mxu0  ;;  %1392 = vmatpush3.bf16.msra.mxu1 %v1389_v41 }
  0xec   :  { %v212_v57 = vadd.f32 %v1252_v56, %v1085_v37  ;;  %v206_v58 = vpop.f32.mrb[7].mxu0 }
  0xed   :  { %1279 = vmatprep.mubr.msk.f32.mxu1 %vm61_vm0, %v259_v55  ;;  %v207_v59 = vadd.f32 %v1085_v37, %v206_v58 }
  0xee   :  { %1280 = vmatmul.mubr.msk.f32.gmra.mrb[4].mxu1 %vm61_vm0, %v260_v54  ;;  %v262_v60 = vmax.f32 %v212_v57, 0.0 }
  0xef   :  { %v261_v61 = vmax.f32 %v207_v59, 0.0  ;;  %v1255_v62 = vpop.f32.mrb[8].mxu0 }
  0xf0   :  { %v222_v63 = vadd.f32 %v1255_v62, %v1085_v37  ;;  %v216_v0 = vpop.f32.mrb[9].mxu0 }
  0xf1   :  { %1282 = vmatprep.mubr.msk.f32.mxu1 %vm61_vm0, %v261_v61  ;;  %v217_v1 = vadd.f32 %v1085_v37, %v216_v0 }
  0xf2   :  { %1283 = vmatmul.mubr.msk.f32.gmra.mrb[6].mxu1 %vm61_vm0, %v262_v60  ;;  %v264_v2 = vmax.f32 %v222_v63, 0.0 }
  0xf3   :  { %v263_v3 = vmax.f32 %v217_v1, 0.0  ;;  %v1258_v4 = vpop.f32.mrb[10].mxu0 }
  0xf4   :  { %v232_v6 = vadd.f32 %v1258_v4, %v1085_v37  ;;  %v226_v7 = vpop.f32.mrb[11].mxu0 }
  0xf5   :  { %1285 = vmatprep.mubr.msk.f32.mxu1 %vm61_vm0, %v263_v3  ;;  %v227_v8 = vadd.f32 %v1085_v37, %v226_v7 }
  0xf6   :  { %1286 = vmatmul.mubr.msk.f32.gmra.mrb[8].mxu1 %vm61_vm0, %v264_v2  ;;  %v266_v9 = vmax.f32 %v232_v6, 0.0 }
  0xf7   :  { %v265_v23 = vmax.f32 %v227_v8, 0.0  ;;  %v1261_v24 = vpop.f32.mrb[12].mxu0 }
  0xf8   :  { %v242_v26 = vadd.f32 %v1261_v24, %v1085_v37  ;;  %v236_v28 = vpop.f32.mrb[13].mxu0 }
  0xf9   :  { %v237_v29 = vadd.f32 %v1085_v37, %v236_v28  ;;  %1288 = vmatprep.mubr.msk.f32.mxu1 %vm61_vm0, %v265_v23 }
  0xfa   :  { %v268_v30 = vmax.f32 %v242_v26, 0.0  ;;  %1289 = vmatmul.mubr.msk.f32.gmra.mrb[10].mxu1 %vm61_vm0, %v266_v9 }
  0xfb   :  { %v267_v31 = vmax.f32 %v237_v29, 0.0  ;;  %v1264_v32 = vpop.f32.mrb[14].mxu0 }
  0xfc   :  { %v252_v33 = vadd.f32 %v1264_v32, %v1085_v37  ;;  %v246_v34 = vpop.f32.mrb[15].mxu0 }
  0xfd   :  { %1291 = vmatprep.mubr.msk.f32.mxu1 %vm61_vm0, %v267_v31  ;;  %v247_v35 = vadd.f32 %v1085_v37, %v246_v34  ;;  %v1664_v37 = vld [vmem:[%s2124_s4] ss:$0 sm:$0xff] }
  0xfe   :  { %1292 = vmatmul.mubr.msk.f32.gmra.mrb[12].mxu1 %vm61_vm0, %v268_v30  ;;  %v270_v36 = vmax.f32 %v252_v33, 0.0 }
  0xff   :  { %v269_v38 = vmax.f32 %v247_v35, 0.0 }
 0x101   :  { %1294 = vmatprep.mubr.msk.f32.mxu1 %vm61_vm0, %v269_v38 }
 0x102   :  { %1295 = vmatmul.mubr.msk.f32.gmra.mrb[14].mxu1 %vm61_vm0, %v270_v36 }
 0x1b9   :  { %v1275_v42 = vpop.f32.mrb[0].mxu1 }
 0x1ba   :  { %v402_v43 = vadd.f32 %v1275_v42, %v1664_v37  ;;  %v396_v44 = vpop.f32.mrb[1].mxu1 }
 0x1bb   :  { %v397_v45 = vadd.f32 %v1664_v37, %v396_v44 }
 0x1bc   :  { %v476_v46 = vadd.f32 %v402_v43, %v1510_v10 }
 0x1bd   :  { %v475_v47 = vadd.f32 %v397_v45, %v1497_v5  ;;  %v1278_v48 = vpop.f32.mrb[2].mxu1 }
 0x1be   :  { %965 = vst.msk [vmem:[%s2125_s9 + $0x8] sm:$0xff] %vm61_vm0, %v476_v46  ;;  %v412_v49 = vadd.f32 %v1278_v48, %v1664_v37  ;;  %v406_v50 = vpop.f32.mrb[3].mxu1 }
 0x1bf   :  { %964 = vst.msk [vmem:[%s2125_s9] sm:$0xff] %vm61_vm0, %v475_v47  ;;  %v407_v51 = vadd.f32 %v1664_v37, %v406_v50  ;;  %1305 = vmatprep.mubr.msk.f32.mxu0 %vm61_vm0, %v475_v47  ;;  %1337 = vmatprep.mubr.msk.f32.mxu1 %vm61_vm0, %v475_v47  ;;  %v1810_v47 = vld [vmem:[%s2127_s8] ss:$0 sm:$0xff] }
 0x1c0   :  { %v478_v5 = vadd.f32 %v412_v49, %v1524_v12  ;;  %1306 = vmatmul.mubr.msk.f32.vlgmr.msra.gmra.mrb[16].mxu0 %vm61_vm0, %v476_v46  ;;  %1338 = vmatmul.mubr.msk.f32.vlgmr.msra.gmra.mrb[16].mxu1 %vm61_vm0, %v476_v46 }
 0x1c1   :  { %v477_v10 = vadd.f32 %v407_v51, %v1515_v11  ;;  %v1281_v52 = vpop.f32.mrb[4].mxu1 }
 0x1c2   :  { %967 = vst.msk [vmem:[%s2125_s9 + $0x18] sm:$0xff] %vm61_vm0, %v478_v5  ;;  %v422_v53 = vadd.f32 %v1281_v52, %v1664_v37  ;;  %v416_v54 = vpop.f32.mrb[5].mxu1 }
 0x1c3   :  { %966 = vst.msk [vmem:[%s2125_s9 + $0x10] sm:$0xff] %vm61_vm0, %v477_v10  ;;  %1308 = vmatprep.mubr.msk.f32.mxu0 %vm61_vm0, %v477_v10  ;;  %1340 = vmatprep.mubr.msk.f32.mxu1 %vm61_vm0, %v477_v10  ;;  %v417_v11 = vadd.f32 %v1664_v37, %v416_v54 }
 0x1c4   :  { %1309 = vmatmul.mubr.msk.f32.gmra.mrb[18].mxu0 %vm61_vm0, %v478_v5  ;;  %1341 = vmatmul.mubr.msk.f32.gmra.mrb[18].mxu1 %vm61_vm0, %v478_v5  ;;  %v480_v12 = vadd.f32 %v422_v53, %v1538_v14 }
 0x1c5   :  { %v479_v55 = vadd.f32 %v417_v11, %v1529_v13  ;;  %v1284_v56 = vpop.f32.mrb[6].mxu1 }
 0x1c6   :  { %969 = vst.msk [vmem:[%s2125_s9 + $0x28] sm:$0xff] %vm61_vm0, %v480_v12  ;;  %v432_v57 = vadd.f32 %v1284_v56, %v1664_v37  ;;  %v426_v58 = vpop.f32.mrb[7].mxu1 }
 0x1c7   :  { %968 = vst.msk [vmem:[%s2125_s9 + $0x20] sm:$0xff] %vm61_vm0, %v479_v55  ;;  %1311 = vmatprep.mubr.msk.f32.mxu0 %vm61_vm0, %v479_v55  ;;  %1343 = vmatprep.mubr.msk.f32.mxu1 %vm61_vm0, %v479_v55  ;;  %v427_v13 = vadd.f32 %v1664_v37, %v426_v58 }
 0x1c8   :  { %1312 = vmatmul.mubr.msk.f32.gmra.mrb[20].mxu0 %vm61_vm0, %v480_v12  ;;  %1344 = vmatmul.mubr.msk.f32.gmra.mrb[20].mxu1 %vm61_vm0, %v480_v12  ;;  %v482_v14 = vadd.f32 %v432_v57, %v1552_v16 }
 0x1c9   :  { %v481_v59 = vadd.f32 %v427_v13, %v1543_v15  ;;  %v1287_v60 = vpop.f32.mrb[8].mxu1 }
 0x1ca   :  { %971 = vst.msk [vmem:[%s2125_s9 + $0x38] sm:$0xff] %vm61_vm0, %v482_v14  ;;  %v442_v61 = vadd.f32 %v1287_v60, %v1664_v37  ;;  %v436_v62 = vpop.f32.mrb[9].mxu1 }
 0x1cb   :  { %970 = vst.msk [vmem:[%s2125_s9 + $0x30] sm:$0xff] %vm61_vm0, %v481_v59  ;;  %1314 = vmatprep.mubr.msk.f32.mxu0 %vm61_vm0, %v481_v59  ;;  %1346 = vmatprep.mubr.msk.f32.mxu1 %vm61_vm0, %v481_v59  ;;  %v437_v15 = vadd.f32 %v1664_v37, %v436_v62 }
 0x1cc   :  { %1315 = vmatmul.mubr.msk.f32.gmra.mrb[22].mxu0 %vm61_vm0, %v482_v14  ;;  %1347 = vmatmul.mubr.msk.f32.gmra.mrb[22].mxu1 %vm61_vm0, %v482_v14  ;;  %v484_v16 = vadd.f32 %v442_v61, %v1566_v18 }
 0x1cd   :  { %v483_v63 = vadd.f32 %v437_v15, %v1557_v17  ;;  %v1290_v0 = vpop.f32.mrb[10].mxu1 }
 0x1ce   :  { %973 = vst.msk [vmem:[%s2125_s9 + $0x48] sm:$0xff] %vm61_vm0, %v484_v16  ;;  %v452_v1 = vadd.f32 %v1290_v0, %v1664_v37  ;;  %v446_v2 = vpop.f32.mrb[11].mxu1 }
 0x1cf   :  { %972 = vst.msk [vmem:[%s2125_s9 + $0x40] sm:$0xff] %vm61_vm0, %v483_v63  ;;  %1317 = vmatprep.mubr.msk.f32.mxu0 %vm61_vm0, %v483_v63  ;;  %1349 = vmatprep.mubr.msk.f32.mxu1 %vm61_vm0, %v483_v63  ;;  %v447_v17 = vadd.f32 %v1664_v37, %v446_v2 }
 0x1d0   :  { %1318 = vmatmul.mubr.msk.f32.gmra.mrb[24].mxu0 %vm61_vm0, %v484_v16  ;;  %1350 = vmatmul.mubr.msk.f32.gmra.mrb[24].mxu1 %vm61_vm0, %v484_v16  ;;  %v486_v18 = vadd.f32 %v452_v1, %v1580_v20 }
 0x1d1   :  { %v485_v3 = vadd.f32 %v447_v17, %v1571_v19  ;;  %v1293_v4 = vpop.f32.mrb[12].mxu1 }
 0x1d2   :  { %975 = vst.msk [vmem:[%s2125_s9 + $0x58] sm:$0xff] %vm61_vm0, %v486_v18  ;;  %v462_v6 = vadd.f32 %v1293_v4, %v1664_v37  ;;  %v456_v7 = vpop.f32.mrb[13].mxu1 }
 0x1d3   :  { %974 = vst.msk [vmem:[%s2125_s9 + $0x50] sm:$0xff] %vm61_vm0, %v485_v3  ;;  %v457_v8 = vadd.f32 %v1664_v37, %v456_v7  ;;  %1320 = vmatprep.mubr.msk.f32.mxu0 %vm61_vm0, %v485_v3  ;;  %1352 = vmatprep.mubr.msk.f32.mxu1 %vm61_vm0, %v485_v3 }
 0x1d4   :  { %v488_v19 = vadd.f32 %v462_v6, %v1594_v22  ;;  %1321 = vmatmul.mubr.msk.f32.gmra.mrb[26].mxu0 %vm61_vm0, %v486_v18  ;;  %1353 = vmatmul.mubr.msk.f32.gmra.mrb[26].mxu1 %vm61_vm0, %v486_v18 }
 0x1d5   :  { %v487_v20 = vadd.f32 %v457_v8, %v1585_v21  ;;  %v1296_v22 = vpop.f32.mrb[14].mxu1 }
 0x1d6   :  { %977 = vst.msk [vmem:[%s2125_s9 + $0x68] sm:$0xff] %vm61_vm0, %v488_v19  ;;  %v472_v21 = vadd.f32 %v1296_v22, %v1664_v37  ;;  %v466_v9 = vpop.f32.mrb[15].mxu1 }
 0x1d7   :  { %976 = vst.msk [vmem:[%s2125_s9 + $0x60] sm:$0xff] %vm61_vm0, %v487_v20  ;;  %1323 = vmatprep.mubr.msk.f32.mxu0 %vm61_vm0, %v487_v20  ;;  %1355 = vmatprep.mubr.msk.f32.mxu1 %vm61_vm0, %v487_v20  ;;  %v467_v23 = vadd.f32 %v1664_v37, %v466_v9 }
 0x1d8   :  { %1324 = vmatmul.mubr.msk.f32.gmra.mrb[28].mxu0 %vm61_vm0, %v488_v19  ;;  %1356 = vmatmul.mubr.msk.f32.gmra.mrb[28].mxu1 %vm61_vm0, %v488_v19  ;;  %v490_v24 = vadd.f32 %v472_v21, %v1614_v27 }
 0x1d9   :  { %v489_v26 = vadd.f32 %v467_v23, %v1607_v25  ;;  %v1797_v25 = vld [vmem:[%s2126_s6] ss:$0 sm:$0xff] }
 0x1da   :  { %979 = vst.msk [vmem:[%s2125_s9 + $0x78] sm:$0xff] %vm61_vm0, %v490_v24 }
 0x1db   :  { %978 = vst.msk [vmem:[%s2125_s9 + $0x70] sm:$0xff] %vm61_vm0, %v489_v26  ;;  %1326 = vmatprep.mubr.msk.f32.mxu0 %vm61_vm0, %v489_v26  ;;  %1358 = vmatprep.mubr.msk.f32.mxu1 %vm61_vm0, %v489_v26  ;;  %s1426_s9 = smov 16  }
 0x1dc   :  { %1327 = vmatmul.mubr.msk.f32.gmra.mrb[30].mxu0 %vm61_vm0, %v490_v24  ;;  %1359 = vmatmul.mubr.msk.f32.gmra.mrb[30].mxu1 %vm61_vm0, %v490_v24 }
 0x293   :  { %v1307_v27 = vpop.f32.mrb[16].mxu0  ;;  %v1339_v28 = vpop.f32.mrb[16].mxu1 }
 0x294   :  { %v622_v29 = vadd.f32 %v1307_v27, %v1797_v25  ;;  %v616_v30 = vpop.f32.mrb[17].mxu0  ;;  %v772_v31 = vpop.f32.mrb[17].mxu1  ;;  %v1813_v48 = vadd.f32 %v1339_v28, %v1810_v47 }
 0x295   :  { %v617_v32 = vadd.f32 %v1797_v25, %v616_v30  ;;  %v1818_v51 = vadd.f32 %v1810_v47, %v772_v31 }
 0x296   :  { %1014 = vrot.lane.b32.xlu1 %v622_v29, %s1426_s9  ;;  %v852_v5 = vmul.f32 %v1813_v48, %v1813_v48 }
 0x297   :  { %v1310_v33 = vpop.f32.mrb[18].mxu0  ;;  %v1342_v34 = vpop.f32.mrb[18].mxu1  ;;  %1012 = vrot.lane.b32.xlu0 %v617_v32, %s1426_s9  ;;  %v851_v54 = vmul.f32 %v1818_v51, %v1818_v51 }
 0x298   :  { %v632_v35 = vadd.f32 %v1310_v33, %v1797_v25  ;;  %v626_v36 = vpop.f32.mrb[19].mxu0  ;;  %v782_v38 = vpop.f32.mrb[19].mxu1  ;;  %v871_v53 = vsel %vm867_vm1, %v852_v5, 0.0  ;;  %v1828_v11 = vadd.f32 %v1342_v34, %v1810_v47 }
 0x299   :  { %v627_v41 = vadd.f32 %v1797_v25, %v626_v36  ;;  %v868_v12 = vsel %vm867_vm1, %v851_v54, 0.0  ;;  %v1832_v55 = vadd.f32 %v1810_v47, %v782_v38 }
 0x29a   :  { %1018 = vrot.lane.b32.xlu1 %v632_v35, %s1426_s9  ;;  %v854_v56 = vmul.f32 %v1828_v11, %v1828_v11 }
 0x29b   :  { %v1313_v39 = vpop.f32.mrb[20].mxu0  ;;  %v1345_v40 = vpop.f32.mrb[20].mxu1  ;;  %v853_v58 = vmul.f32 %v1832_v55, %v1832_v55 }
 0x29c   :  { %v636_v37 = vpop.f32.mrb[21].mxu0  ;;  %v792_v42 = vpop.f32.mrb[21].mxu1  ;;  %v877_v57 = vsel %vm867_vm1, %v854_v56, 0.0  ;;  %v642_v59 = vadd.f32 %v1313_v39, %v1797_v25  ;;  %v1859_v1 = vadd.f32 %v1345_v40, %v1810_v47 }
 0x29d   :  { %v874_v13 = vsel %vm867_vm1, %v853_v58, 0.0  ;;  %v637_v14 = vadd.f32 %v1797_v25, %v636_v37  ;;  %v1849_v62 = vadd.f32 %v1810_v47, %v792_v42 }
 0x29e   :  { %1016 = vrot.lane.b32.xlu1 %v627_v41, %s1426_s9  ;;  %v856_v2 = vmul.f32 %v1859_v1, %v1859_v1 }
 0x29f   :  { %v1316_v43 = vpop.f32.mrb[22].mxu0  ;;  %v1348_v44 = vpop.f32.mrb[22].mxu1  ;;  %v855_v63 = vmul.f32 %v1849_v62, %v1849_v62 }
 0x2a0   :  { %v646_v45 = vpop.f32.mrb[23].mxu0  ;;  %v802_v46 = vpop.f32.mrb[23].mxu1  ;;  %v883_v17 = vsel %vm867_vm1, %v856_v2, 0.0  ;;  %v652_v19 = vadd.f32 %v1316_v43, %v1797_v25  ;;  %v1891_v26 = vadd.f32 %v1348_v44, %v1810_v47 }
 0x2a1   :  { %v880_v0 = vsel %vm867_vm1, %v855_v63, 0.0  ;;  %v647_v18 = vadd.f32 %v1797_v25, %v646_v45  ;;  %v1885_v9 = vadd.f32 %v1810_v47, %v802_v46 }
 0x2a2   :  { %v858_v27 = vmul.f32 %v1891_v26, %v1891_v26 }
 0x2a3   :  { %v1319_v49 = vpop.f32.mrb[24].mxu0  ;;  %v1815_v50 = vpop.f32.mrb[24].mxu1  ;;  %v857_v23 = vmul.f32 %v1885_v9, %v1885_v9 }
 0x2a4   :  { %v656_v10 = vpop.f32.mrb[25].mxu0  ;;  %v1822_v52 = vpop.f32.mrb[25].mxu1  ;;  %v889_v28 = vsel %vm867_vm1, %v858_v27, 0.0  ;;  %v662_v32 = vadd.f32 %v1319_v49, %v1797_v25 }
 0x2a5   :  { %v886_v24 = vsel %vm867_vm1, %v857_v23, 0.0  ;;  %v657_v29 = vadd.f32 %v1797_v25, %v656_v10  ;;  %v1902_v37 = vadd.f32 %v1810_v47, %v1822_v52  ;;  %v1927_v52 = vadd.f32 %v1815_v50, %v1810_v47 }
 0x2a7   :  { %v1844_v60 = vpop.f32.mrb[26].mxu0  ;;  %v1846_v61 = vpop.f32.mrb[26].mxu1  ;;  %v859_v49 = vmul.f32 %v1902_v37, %v1902_v37  ;;  %v860_v54 = vmul.f32 %v1927_v52, %v1927_v52 }
 0x2a8   :  { %v1851_v15 = vpop.f32.mrb[27].mxu0  ;;  %v1853_v16 = vpop.f32.mrb[27].mxu1 }
 0x2a9   :  { %v895_v50 = vsel %vm867_vm1, %v860_v54, 0.0 }
 0x2ab   :  { %v1866_v3 = vpop.f32.mrb[28].mxu0  ;;  %v1868_v4 = vpop.f32.mrb[28].mxu1 }
 0x2ac   :  { %v1870_v6 = vpop.f32.mrb[29].mxu0  ;;  %v1872_v7 = vpop.f32.mrb[29].mxu1 }
 0x2af   :  { %v1874_v8 = vpop.f32.mrb[30].mxu0  ;;  %v1877_v20 = vpop.f32.mrb[30].mxu1 }
 0x2b0   :  { %v1879_v22 = vpop.f32.mrb[31].mxu0  ;;  %v1881_v21 = vpop.f32.mrb[31].mxu1 }
 0x2b6   :  { %872 = vadd.xlane.f32.xlu0 %v871_v53 }
 0x2ba   :  { %869 = vadd.xlane.f32.xlu0 %v868_v12 }
 0x2c2   :  { %878 = vadd.xlane.f32.xlu1 %v877_v57 }
 0x2c6   :  { %875 = vadd.xlane.f32.xlu1 %v874_v13 }
 0x2d0   :  { %1020 = vrot.lane.b32.xlu0 %v637_v14, %s1426_s9  ;;  %v1958_v14 = vadd.f32 %v1810_v47, %v1853_v16  ;;  %v1974_v16 = vadd.f32 %v1846_v61, %v1810_v47  ;;  %v677_v61 = vadd.f32 %v1797_v25, %v1870_v6  ;;  %v2000_v6 = vadd.f32 %v1810_v47, %v1881_v21 }
 0x2d2   :  { %v865_v21 = vmul.f32 %v2000_v6, %v2000_v6 }
 0x2d7   :  { %1022 = vrot.lane.b32.xlu1 %v642_v59, %s1426_s9 }
 0x2ef   :  { %881 = vadd.xlane.f32.xlu0 %v880_v0 }
 0x2fb   :  { %884 = vadd.xlane.f32.xlu1 %v883_v17 }
 0x305   :  { %1024 = vrot.lane.b32.xlu0 %v647_v18, %s1426_s9 }
 0x308   :  { %v1015_v30 = vpop.permute.xlu1 %1014 }
 0x309   :  { %v1013_v31 = vpop.permute.xlu0 %1012 }
 0x30c   :  { %1026 = vrot.lane.b32.xlu1 %v652_v19, %s1426_s9  ;;  %v1019_v35 = vpop.permute.xlu1 %1018 }
 0x310   :  { %v1017_v39 = vpop.permute.xlu1 %1016 }
 0x324   :  { %887 = vadd.xlane.f32.xlu0 %v886_v24 }
 0x330   :  { %890 = vadd.xlane.f32.xlu1 %v889_v28 }
 0x33a   :  { %1028 = vrot.lane.b32.xlu0 %v657_v29, %s1426_s9  ;;  %v1996_v29 = vadd.f32 %v1810_v47, %v1872_v7 }
 0x341   :  { %1030 = vrot.lane.b32.xlu1 %v662_v32, %s1426_s9 }
 0x343   :  { %v873_v33 = vpop.xlane.xlu0 %872 }
 0x344   :  { %v917_v34 = vadd.f32 1e-12, %v873_v33 }
 0x346   :  { %1394 = vrsqrt.f32 %v917_v34  ;;  %v910_v34 = vsel %vm867_vm1, %v865_v21, 0.0 }
 0x347   :  { %v870_v36 = vpop.xlane.xlu0 %869 }
 0x348   :  { %v916_v38 = vadd.f32 1e-12, %v870_v36  ;;  %v2023_v36 = vadd.f32 %v1877_v20, %v1810_v47 }
 0x34a   :  { %1396 = vrsqrt.f32 %v916_v38 }
 0x34b   :  { %v1021_v56 = vpop.permute.xlu0 %1020 }
 0x34f   :  { %v879_v40 = vpop.xlane.xlu1 %878 }
 0x350   :  { %v1395_v41 = vpop.eup %1394  ;;  %v919_v42 = vadd.f32 1e-12, %v879_v40  ;;  %v692_v40 = vadd.f32 %v1874_v8, %v1797_v25 }
 0x351   :  { %v949_v43 = vmul.f32 %v1395_v41, %v1813_v48  ;;  %v892_v48 = vsel %vm867_vm1, %v859_v49, 0.0 }
 0x352   :  { %1398 = vrsqrt.f32 %v919_v42 }
 0x353   :  { %981 = vst.msk [vmem:[%s2128_s10 + $0x8] sm:$0xff] %vm867_vm1, %v949_v43  ;;  %v876_v44 = vpop.xlane.xlu1 %875 }
 0x354   :  { %v1397_v45 = vpop.eup %1396  ;;  %1062 = vst.msk [vmem:[%s2128_s10 + $0x8] sm:$0xff] %vm1060_vm2, %v1015_v30  ;;  %v918_v46 = vadd.f32 1e-12, %v876_v44 }
 0x355   :  { %v948_v5 = vmul.f32 %v1397_v45, %v1818_v51 }
 0x356   :  { %1400 = vrsqrt.f32 %v918_v46 }
 0x357   :  { %980 = vst.msk [vmem:[%s2128_s10] sm:$0xff] %vm867_vm1, %v948_v5  ;;  %v1023_v13 = vpop.permute.xlu1 %1022 }
 0x358   :  { %1061 = vst.msk [vmem:[%s2128_s10] sm:$0xff] %vm1060_vm2, %v1013_v31 }
 0x359   :  { %893 = vadd.xlane.f32.xlu0 %v892_v48 }
 0x35c   :  { %v1399_v10 = vpop.eup %1398 }
 0x35d   :  { %v951_v51 = vmul.f32 %v1399_v10, %v1828_v11  ;;  %v667_v11 = vadd.f32 %v1797_v25, %v1851_v15  ;;  %v861_v15 = vmul.f32 %v1958_v14, %v1958_v14 }
 0x35f   :  { %983 = vst.msk [vmem:[%s2128_s10 + $0x18] sm:$0xff] %vm867_vm1, %v951_v51 }
 0x360   :  { %v1401_v53 = vpop.eup %1400  ;;  %1064 = vst.msk [vmem:[%s2128_s10 + $0x18] sm:$0xff] %vm1060_vm2, %v1019_v35 }
 0x361   :  { %v950_v12 = vmul.f32 %v1401_v53, %v1832_v55  ;;  %v672_v55 = vadd.f32 %v1844_v60, %v1797_v25  ;;  %v898_v60 = vsel %vm867_vm1, %v861_v15, 0.0 }
 0x363   :  { %982 = vst.msk [vmem:[%s2128_s10 + $0x10] sm:$0xff] %vm867_vm1, %v950_v12 }
 0x364   :  { %1063 = vst.msk [vmem:[%s2128_s10 + $0x10] sm:$0xff] %vm1060_vm2, %v1017_v39 }
 0x365   :  { %896 = vadd.xlane.f32.xlu1 %v895_v50 }
 0x36f   :  { %1032 = vrot.lane.b32.xlu0 %v667_v11, %s1426_s9 }
 0x376   :  { %1034 = vrot.lane.b32.xlu1 %v672_v55, %s1426_s9 }
 0x37c   :  { %v882_v57 = vpop.xlane.xlu0 %881 }
 0x37d   :  { %v920_v58 = vadd.f32 1e-12, %v882_v57 }
 0x37f   :  { %1402 = vrsqrt.f32 %v920_v58 }
 0x380   :  { %v1025_v23 = vpop.permute.xlu0 %1024 }
 0x388   :  { %v885_v59 = vpop.xlane.xlu1 %884 }
 0x389   :  { %v1403_v63 = vpop.eup %1402  ;;  %v921_v0 = vadd.f32 1e-12, %v885_v59 }
 0x38a   :  { %v952_v2 = vmul.f32 %v1403_v63, %v1849_v62  ;;  %v862_v62 = vmul.f32 %v1974_v16, %v1974_v16 }
 0x38b   :  { %1404 = vrsqrt.f32 %v921_v0 }
 0x38c   :  { %984 = vst.msk [vmem:[%s2128_s10 + $0x20] sm:$0xff] %vm867_vm1, %v952_v2  ;;  %v901_v19 = vsel %vm867_vm1, %v862_v62, 0.0  ;;  %v1027_v28 = vpop.permute.xlu1 %1026 }
 0x38d   :  { %1065 = vst.msk [vmem:[%s2128_s10 + $0x20] sm:$0xff] %vm1060_vm2, %v1021_v56 }
 0x38e   :  { %899 = vadd.xlane.f32.xlu0 %v898_v60 }
 0x395   :  { %v1405_v17 = vpop.eup %1404 }
 0x396   :  { %v953_v18 = vmul.f32 %v1405_v17, %v1859_v1  ;;  %v682_v1 = vadd.f32 %v1866_v3, %v1797_v25  ;;  %v863_v3 = vmul.f32 %v1996_v29, %v1996_v29 }
 0x398   :  { %985 = vst.msk [vmem:[%s2128_s10 + $0x28] sm:$0xff] %vm867_vm1, %v953_v18  ;;  %v904_v7 = vsel %vm867_vm1, %v863_v3, 0.0 }
 0x399   :  { %1066 = vst.msk [vmem:[%s2128_s10 + $0x28] sm:$0xff] %vm1060_vm2, %v1023_v13 }
 0x39a   :  { %902 = vadd.xlane.f32.xlu1 %v901_v19 }
 0x3a4   :  { %1036 = vrot.lane.b32.xlu0 %v677_v61, %s1426_s9 }
 0x3ab   :  { %1038 = vrot.lane.b32.xlu1 %v682_v1, %s1426_s9 }
 0x3b1   :  { %v888_v24 = vpop.xlane.xlu0 %887 }
 0x3b2   :  { %v922_v27 = vadd.f32 1e-12, %v888_v24 }
 0x3b4   :  { %1406 = vrsqrt.f32 %v922_v27 }
 0x3b5   :  { %v1029_v41 = vpop.permute.xlu0 %1028 }
 0x3bd   :  { %v891_v30 = vpop.xlane.xlu1 %890 }
 0x3be   :  { %v1407_v31 = vpop.eup %1406  ;;  %v923_v32 = vadd.f32 1e-12, %v891_v30 }
 0x3bf   :  { %v954_v33 = vmul.f32 %v1407_v31, %v1885_v9  ;;  %v2018_v9 = vadd.f32 %v1868_v4, %v1810_v47  ;;  %v866_v47 = vmul.f32 %v2023_v36, %v2023_v36 }
 0x3c0   :  { %1408 = vrsqrt.f32 %v923_v32 }
 0x3c1   :  { %986 = vst.msk [vmem:[%s2128_s10 + $0x30] sm:$0xff] %vm867_vm1, %v954_v33  ;;  %v864_v38 = vmul.f32 %v2018_v9, %v2018_v9  ;;  %v913_v20 = vsel %vm867_vm1, %v866_v47, 0.0  ;;  %v1031_v44 = vpop.permute.xlu1 %1030 }
 0x3c2   :  { %1067 = vst.msk [vmem:[%s2128_s10 + $0x30] sm:$0xff] %vm1060_vm2, %v1025_v23 }
 0x3c3   :  { %905 = vadd.xlane.f32.xlu0 %v904_v7  ;;  %v907_v4 = vsel %vm867_vm1, %v864_v38, 0.0 }
 0x3c7   :  { %911 = vadd.xlane.f32.xlu0 %v910_v34 }
 0x3ca   :  { %v1409_v35 = vpop.eup %1408 }
 0x3cb   :  { %v955_v39 = vmul.f32 %v1409_v35, %v1891_v26  ;;  %v687_v26 = vadd.f32 %v1797_v25, %v1879_v22 }
 0x3cd   :  { %987 = vst.msk [vmem:[%s2128_s10 + $0x38] sm:$0xff] %vm867_vm1, %v955_v39 }
 0x3ce   :  { %1068 = vst.msk [vmem:[%s2128_s10 + $0x38] sm:$0xff] %vm1060_vm2, %v1027_v28 }
 0x3cf   :  { %908 = vadd.xlane.f32.xlu1 %v907_v4 }
 0x3d3   :  { %914 = vadd.xlane.f32.xlu1 %v913_v20 }
 0x3dd   :  { %1040 = vrot.lane.b32.xlu0 %v687_v26, %s1426_s9 }
 0x3e4   :  { %1042 = vrot.lane.b32.xlu1 %v692_v40, %s1426_s9 }
 0x3e6   :  { %v894_v42 = vpop.xlane.xlu0 %893 }
 0x3e7   :  { %v924_v43 = vadd.f32 1e-12, %v894_v42 }
 0x3e9   :  { %1410 = vrsqrt.f32 %v924_v43 }
 0x3ea   :  { %v1033_v22 = vpop.permute.xlu0 %1032 }
 0x3f2   :  { %v897_v45 = vpop.xlane.xlu1 %896 }
 0x3f3   :  { %v1411_v46 = vpop.eup %1410  ;;  %v925_v49 = vadd.f32 1e-12, %v897_v45 }
 0x3f4   :  { %v956_v5 = vmul.f32 %v1411_v46, %v1902_v37 }
 0x3f5   :  { %1412 = vrsqrt.f32 %v925_v49 }
 0x3f6   :  { %988 = vst.msk [vmem:[%s2128_s10 + $0x40] sm:$0xff] %vm867_vm1, %v956_v5  ;;  %v1035_v10 = vpop.permute.xlu1 %1034 }
 0x3f7   :  { %1069 = vst.msk [vmem:[%s2128_s10 + $0x40] sm:$0xff] %vm1060_vm2, %v1029_v41 }
 0x3ff   :  { %v1413_v25 = vpop.eup %1412 }
 0x400   :  { %v957_v8 = vmul.f32 %v1413_v25, %v1927_v52 }
 0x402   :  { %989 = vst.msk [vmem:[%s2128_s10 + $0x48] sm:$0xff] %vm867_vm1, %v957_v8 }
 0x403   :  { %1070 = vst.msk [vmem:[%s2128_s10 + $0x48] sm:$0xff] %vm1060_vm2, %v1031_v44 }
 0x41b   :  { %v900_v37 = vpop.xlane.xlu0 %899 }
 0x41c   :  { %v926_v48 = vadd.f32 1e-12, %v900_v37 }
 0x41e   :  { %1414 = vrsqrt.f32 %v926_v48 }
 0x41f   :  { %v1037_v11 = vpop.permute.xlu0 %1036 }
 0x427   :  { %v903_v51 = vpop.xlane.xlu1 %902 }
 0x428   :  { %v1415_v53 = vpop.eup %1414  ;;  %v927_v54 = vadd.f32 1e-12, %v903_v51 }
 0x429   :  { %v958_v52 = vmul.f32 %v1415_v53, %v1958_v14 }
 0x42a   :  { %1416 = vrsqrt.f32 %v927_v54 }
 0x42b   :  { %990 = vst.msk [vmem:[%s2128_s10 + $0x50] sm:$0xff] %vm867_vm1, %v958_v52  ;;  %v1039_v13 = vpop.permute.xlu1 %1038 }
 0x42c   :  { %1071 = vst.msk [vmem:[%s2128_s10 + $0x50] sm:$0xff] %vm1060_vm2, %v1033_v22 }
 0x434   :  { %v1417_v12 = vpop.eup %1416 }
 0x435   :  { %v959_v50 = vmul.f32 %v1417_v12, %v1974_v16 }
 0x437   :  { %991 = vst.msk [vmem:[%s2128_s10 + $0x58] sm:$0xff] %vm867_vm1, %v959_v50 }
 0x438   :  { %1072 = vst.msk [vmem:[%s2128_s10 + $0x58] sm:$0xff] %vm1060_vm2, %v1035_v10 }
 0x450   :  { %v906_v55 = vpop.xlane.xlu0 %905 }
 0x451   :  { %v928_v56 = vadd.f32 1e-12, %v906_v55 }
 0x453   :  { %1418 = vrsqrt.f32 %v928_v56 }
 0x454   :  { %v912_v57 = vpop.xlane.xlu0 %911 }
 0x455   :  { %v930_v58 = vadd.f32 1e-12, %v912_v57 }
 0x457   :  { %1420 = vrsqrt.f32 %v930_v58 }
 0x458   :  { %v1041_v17 = vpop.permute.xlu0 %1040 }
 0x45c   :  { %v909_v14 = vpop.xlane.xlu1 %908 }
 0x45d   :  { %v1419_v59 = vpop.eup %1418  ;;  %v929_v63 = vadd.f32 1e-12, %v909_v14 }
 0x45e   :  { %v960_v0 = vmul.f32 %v1419_v59, %v1996_v29 }
 0x45f   :  { %1422 = vrsqrt.f32 %v929_v63 }
 0x460   :  { %992 = vst.msk [vmem:[%s2128_s10 + $0x60] sm:$0xff] %vm867_vm1, %v960_v0  ;;  %v915_v15 = vpop.xlane.xlu1 %914 }
 0x461   :  { %v1421_v2 = vpop.eup %1420  ;;  %1073 = vst.msk [vmem:[%s2128_s10 + $0x60] sm:$0xff] %vm1060_vm2, %v1037_v11  ;;  %v931_v60 = vadd.f32 1e-12, %v915_v15 }
 0x462   :  { %v962_v16 = vmul.f32 %v1421_v2, %v2000_v6 }
 0x463   :  { %1424 = vrsqrt.f32 %v931_v60 }
 0x464   :  { %994 = vst.msk [vmem:[%s2128_s10 + $0x70] sm:$0xff] %vm867_vm1, %v962_v16  ;;  %v1043_v1 = vpop.permute.xlu1 %1042 }
 0x465   :  { %1075 = vst.msk [vmem:[%s2128_s10 + $0x70] sm:$0xff] %vm1060_vm2, %v1041_v17 }
 0x469   :  { %v1423_v62 = vpop.eup %1422 }
 0x46a   :  { %v961_v18 = vmul.f32 %v1423_v62, %v2018_v9 }
 0x46c   :  { %993 = vst.msk [vmem:[%s2128_s10 + $0x68] sm:$0xff] %vm867_vm1, %v961_v18 }
 0x46d   :  { %v1425_v19 = vpop.eup %1424  ;;  %1074 = vst.msk [vmem:[%s2128_s10 + $0x68] sm:$0xff] %vm1060_vm2, %v1039_v13 }
 0x46e   :  { %v963_v61 = vmul.f32 %v1425_v19, %v2023_v36 }
 0x470   :  { %995 = vst.msk [vmem:[%s2128_s10 + $0x78] sm:$0xff] %vm867_vm1, %v963_v61 }
 0x471   :  { %1076 = vst.msk [vmem:[%s2128_s10 + $0x78] sm:$0xff] %vm1060_vm2, %v1043_v1 }

</bundles_post_ra>
